<compile_context>
chip_gen: v6e
topology: v6e:2x2x1
jax: 0.10.0
libtpu: 0.0.40
codegen_flags: <defaults>
</compile_context>

<pallas_src>
import math
import numpy as np
import jax
import jax.numpy as jnp
from jax import lax
from jax.experimental import pallas as pl
from jax.experimental import pallas as _pl_unused  # noqa: F401
from jax.experimental.pallas import tpu as pltpu  # noqa: F401  (not needed for this kernel)

# ---------------- model hyper-params (small, consistent with the module) ----
B = 2          # batch
S = 8          # sequence length
D = 32         # d_model
H = 4          # n_heads
DK = D // H    # d_k
DFF = 64       # d_ff
EPS = 1e-5     # nn.LayerNorm default eps

BS = B * S     # 16 rows of x
R = H * B * S  # 64 replicated attention rows, (b, h, s) order


def encoder_layer_kernel(x_ref, wqkv_ref, wo_ref, w1_ref, w2_ref, vec_ref, const_ref,
                         out_ref):
    f32 = jnp.float32
    x = x_ref[...]                                                       # [BS, D]

    # ---- precomputed constants (loaded, overlap with input DMA; no iota chains) ----
    consts = const_ref[...]                                              # [R, 72]
    addmask = consts[:, 0:BS]                                            # 0 / -1e9  [R, BS]
    keep = consts[:, BS:2 * BS]                                          # 0 / 1     [R, BS]
    headmask = consts[:, 2 * BS:2 * BS + D]                              # 0 / 1     [R, D]
    foldF = consts[0:BS, 2 * BS + D:2 * BS + D + S]                      # 0 / 1     [BS, S]

    # ---- fused Q/K/V projection (1/sqrt(d_k) already folded into Wq/bq at pack time) ----
    qkv = jnp.dot(x, wqkv_ref[...], preferred_element_type=f32) + vec_ref[0:1, :]   # [BS, 3D]
    q = qkv[:, 0:D]
    k = qkv[:, D:2 * D]
    v = qkv[:, 2 * D:3 * D]

    # ---- replicate q rows b-major: row r = b*H*S + h*S + s; mask to the row's head lanes ----
    q_r = jnp.concatenate([q[b * S:(b + 1) * S] for b in range(B) for _ in range(H)],
                          axis=0)                                        # [R, D]
    q_r = q_r * headmask

    # ---- all (batch, head) score blocks with a single [R, BS] matmul ----
    scores = lax.dot_general(q_r, k, (((1,), (1,)), ((), ())),
                             preferred_element_type=f32) + addmask       # [R, BS]
    m = jnp.max(scores, axis=-1, keepdims=True)
    e = jnp.exp(scores - m) * keep          # keep-mask guarantees EXACT zeros cross-batch
    attn = e / jnp.sum(e, axis=-1, keepdims=True)                        # [R, BS]

    # ---- context + attention-weight fold in one matmul: attn @ [v | fold] ----
    rhs = jnp.concatenate([v, foldF], axis=1)                            # [BS, D+S]
    cf = jnp.dot(attn, rhs, preferred_element_type=f32)                  # [R, D+S]
    ctx = cf[:, 0:D] * headmask                                          # [R, D] (own head lanes)
    attn_w = cf[:, D:D + S]                                              # [R, S]

    # ---- sum the H head row-blocks per batch BEFORE Wo (heads live in disjoint lanes) ----
    pieces = []
    for b in range(B):
        acc = ctx[b * H * S:b * H * S + S]
        for h in range(1, H):
            acc = acc + ctx[b * H * S + h * S:b * H * S + (h + 1) * S]
        pieces.append(acc)
    ctx_sum = jnp.concatenate(pieces, axis=0)                            # [BS, D]

    attn_out = jnp.dot(ctx_sum, wo_ref[...], preferred_element_type=f32) + vec_ref[1:2, 0:D]

    # ---- residual + LayerNorm 1 ----
    h1 = x + attn_out
    mu1 = jnp.mean(h1, axis=-1, keepdims=True)
    var1 = jnp.mean((h1 - mu1) ** 2, axis=-1, keepdims=True)
    x1 = (h1 - mu1) * lax.rsqrt(var1 + EPS) * vec_ref[4:5, 0:D] + vec_ref[5:6, 0:D]

    # ---- feed-forward (dropout = identity in eval) ----
    ff = jnp.maximum(jnp.dot(x1, w1_ref[...], preferred_element_type=f32)
                     + vec_ref[2:3, 0:DFF], 0.0)
    ff = jnp.dot(ff, w2_ref[...], preferred_element_type=f32) + vec_ref[3:4, 0:D]

    # ---- residual + LayerNorm 2 ----
    h2 = x1 + ff
    mu2 = jnp.mean(h2, axis=-1, keepdims=True)
    var2 = jnp.mean((h2 - mu2) ** 2, axis=-1, keepdims=True)
    y = (h2 - mu2) * lax.rsqrt(var2 + EPS) * vec_ref[6:7, 0:D] + vec_ref[7:8, 0:D]   # [BS, D]

    # ---- lane-dense packed output: one [80, 128] slab, dense 128-lane stores, 1 DMA ----
    out_ref[0:BS, :] = jnp.concatenate(
        [y, jnp.zeros((BS, 128 - D), f32)], axis=1)                      # rows 0:16
    out_ref[BS:BS + R, :] = jnp.concatenate(
        [attn_w, jnp.zeros((R, 128 - S), f32)], axis=1)                  # rows 16:80


def pack_params(params):
    """Init-time packing: 4 weight matrices, one bias/LN row table, one constant table."""
    (wq, bq, wk, bk, wv, bv, wo, bo, g1, be1, w1, b1, w2, b2, g2, be2) = params

    scale = 1.0 / math.sqrt(DK)                       # fold attention scale into Wq/bq
    wqkv = jnp.concatenate([wq * scale, wk, wv], axis=1)                 # [D, 3D]
    width = 3 * D

    def row(vv):
        return jnp.pad(vv, (0, width - vv.shape[0]))[None, :]

    vecs = jnp.concatenate([
        row(jnp.concatenate([bq * scale, bk, bv])),   # 0: fused qkv bias (96)
        row(bo),                                      # 1
        row(b1),                                      # 2 (64)
        row(b2),                                      # 3
        row(g1), row(be1), row(g2), row(be2)          # 4..7
    ], axis=0)                                                           # [8, 3D]

    # Constant table [R, 72]: additive batch mask | 0/1 keep mask | head lane mask | fold.
    r = np.arange(R)
    b_r = r // (H * S)
    h_r = (r // S) % H
    c = np.arange(BS)
    b_c = c // S
    same_batch = (b_r[:, None] == b_c[None, :])
    addmask = np.where(same_batch, 0.0, -1e9).astype(np.float32)         # [R, BS]
    keep = same_batch.astype(np.float32)                                 # [R, BS]
    lanes = np.arange(D)
    headmask = (h_r[:, None] == (lanes[None, :] // DK)).astype(np.float32)   # [R, D]
    fold = np.zeros((R, S), np.float32)
    fold[:BS, :] = (c[:, None] % S == np.arange(S)[None, :]).astype(np.float32)
    consts = jnp.asarray(np.concatenate([addmask, keep, headmask, fold], axis=1))  # [R, 72]

    return (wqkv, wo, w1, w2, vecs, consts)


def encoder_layer(x, packed):
    """x: [B, S, D] f32. Returns (out [B, S, D], attn_weights [B, H, S, S])."""
    wqkv, wo, w1, w2, vecs, consts = packed
    x2 = x.reshape(BS, D)

    slab = pl.pallas_call(
        encoder_layer_kernel,
        out_shape=jax.ShapeDtypeStruct((BS + R, 128), jnp.float32),
    )(x2, wqkv, wo, w1, w2, vecs, consts)

    out = slab[0:BS, 0:D].reshape(B, S, D)
    attn_w = slab[BS:, 0:S].reshape(B, H, S, S)      # rows already in (b, h, s) order
    return out, attn_w


# ---------------- pure-JAX reference for verification -----------------------
def reference(x, params):
    (wq, bq, wk, bk, wv, bv, wo, bo, g1, be1, w1, b1, w2, b2, g2, be2) = params
    q = x @ wq + bq
    k = x @ wk + bk
    v = x @ wv + bv
    qh = q.reshape(B, S, H, DK).transpose(0, 2, 1, 3)
    kh = k.reshape(B, S, H, DK).transpose(0, 2, 1, 3)
    vh = v.reshape(B, S, H, DK).transpose(0, 2, 1, 3)
    scores = jnp.einsum("bhqd,bhkd->bhqk", qh, kh) / math.sqrt(DK)
    attn = jax.nn.softmax(scores, axis=-1)
    ctx = jnp.einsum("bhqk,bhkd->bhqd", attn, vh).transpose(0, 2, 1, 3).reshape(B, S, D)
    attn_out = ctx @ wo + bo

    def ln(y, g, b):
        mu = jnp.mean(y, -1, keepdims=True)
        var = jnp.mean((y - mu) ** 2, -1, keepdims=True)
        return (y - mu) / jnp.sqrt(var + EPS) * g + b

    x1 = ln(x + attn_out, g1, be1)
    ff = jnp.maximum(x1 @ w1 + b1, 0.0) @ w2 + b2
    x2 = ln(x1 + ff, g2, be2)
    return x2, attn


if __name__ == "__main__":
    key = jax.random.PRNGKey(0)
    keys = jax.random.split(key, 8)

    def lin(kk, fan_in, fan_out):
        lim = 1.0 / math.sqrt(fan_in)
        kw, kb = jax.random.split(kk)
        w = jax.random.uniform(kw, (fan_in, fan_out), jnp.float32, -lim, lim)
        b = jax.random.uniform(kb, (fan_out,), jnp.float32, -lim, lim)
        return w, b

    wq, bq = lin(keys[0], D, D)
    wk, bk = lin(keys[1], D, D)
    wv, bv = lin(keys[2], D, D)
    wo, bo = lin(keys[3], D, D)
    g1, be1 = jnp.ones((D,), jnp.float32), jnp.zeros((D,), jnp.float32)
    w1, b1 = lin(keys[4], D, DFF)
    w2, b2 = lin(keys[5], DFF, D)
    g2, be2 = jnp.ones((D,), jnp.float32), jnp.zeros((D,), jnp.float32)

    params = (wq, bq, wk, bk, wv, bv, wo, bo, g1, be1, w1, b1, w2, b2, g2, be2)

    x = jax.random.normal(keys[6], (B, S, D), jnp.float32)

    # Pack once at init (NOT on the forward path), jit the forward.
    packed = jax.tree_util.tree_map(jax.device_put, pack_params(params))
    fwd = jax.jit(encoder_layer)

    out, attn_w = fwd(x, packed)
    jax.block_until_ready((out, attn_w))

    ref_out, ref_attn = reference(x, params)
    assert out.shape == (B, S, D) and attn_w.shape == (B, H, S, S)
    assert jnp.allclose(out, ref_out, atol=1e-4, rtol=1e-4)
    assert jnp.allclose(attn_w, ref_attn, atol=1e-5, rtol=1e-4)

    print("KERNEL_OK")
</pallas_src>

<mosaic_0001>
module attributes {stable_mosaic.version = 11 : i64} {
  func.func @encoder_layer_kernel(%arg0: memref<16x32xf32, #tpu.memory_space<vmem>>, %arg1: memref<32x96xf32, #tpu.memory_space<vmem>>, %arg2: memref<32x32xf32, #tpu.memory_space<vmem>>, %arg3: memref<32x64xf32, #tpu.memory_space<vmem>>, %arg4: memref<64x32xf32, #tpu.memory_space<vmem>>, %arg5: memref<8x96xf32, #tpu.memory_space<vmem>>, %arg6: memref<64x72xf32, #tpu.memory_space<vmem>>, %arg7: memref<80x128xf32, #tpu.memory_space<vmem>>) attributes {dimension_semantics = [], scalar_prefetch = 0 : i64, scratch_operands = 0 : i64, tpu.core_type = #tpu.core_type<tc>} {
    %c0 = arith.constant 0 : index
    %c0_0 = arith.constant 0 : index
    %0 = vector.load %arg0[%c0, %c0_0] : memref<16x32xf32, #tpu.memory_space<vmem>>, vector<16x32xf32>
    %c0_1 = arith.constant 0 : index
    %c0_2 = arith.constant 0 : index
    %1 = vector.load %arg6[%c0_1, %c0_2] : memref<64x72xf32, #tpu.memory_space<vmem>>, vector<64x72xf32>
    %2 = vector.extract_strided_slice %1 {offsets = [0, 0], sizes = [64, 16], strides = [1, 1]} : vector<64x72xf32> to vector<64x16xf32>
    %3 = vector.extract_strided_slice %1 {offsets = [0, 16], sizes = [64, 16], strides = [1, 1]} : vector<64x72xf32> to vector<64x16xf32>
    %4 = vector.extract_strided_slice %1 {offsets = [0, 32], sizes = [64, 32], strides = [1, 1]} : vector<64x72xf32> to vector<64x32xf32>
    %5 = vector.extract_strided_slice %1 {offsets = [0, 64], sizes = [16, 8], strides = [1, 1]} : vector<64x72xf32> to vector<16x8xf32>
    %c0_3 = arith.constant 0 : index
    %c0_4 = arith.constant 0 : index
    %6 = vector.load %arg1[%c0_3, %c0_4] : memref<32x96xf32, #tpu.memory_space<vmem>>, vector<32x96xf32>
    %cst = arith.constant dense<0.000000e+00> : vector<16x96xf32>
    %7 = tpu.matmul %0, %6, %cst {dimension_numbers = #tpu.dot_dimension_numbers<[1], [0], [0], [1], [0, 0, 1, 1], [], []>} : vector<16x32xf32>, vector<32x96xf32>, vector<16x96xf32> -> vector<16x96xf32>
    %c0_5 = arith.constant 0 : index
    %c0_6 = arith.constant 0 : index
    %8 = vector.load %arg5[%c0_5, %c0_6] : memref<8x96xf32, #tpu.memory_space<vmem>>, vector<1x96xf32>
    %9 = vector.broadcast %8 : vector<1x96xf32> to vector<16x96xf32>
    %10 = arith.addf %7, %9 : vector<16x96xf32>
    %11 = vector.extract_strided_slice %10 {offsets = [0, 0], sizes = [16, 32], strides = [1, 1]} : vector<16x96xf32> to vector<16x32xf32>
    %12 = vector.extract_strided_slice %10 {offsets = [0, 32], sizes = [16, 32], strides = [1, 1]} : vector<16x96xf32> to vector<16x32xf32>
    %13 = vector.extract_strided_slice %10 {offsets = [0, 64], sizes = [16, 32], strides = [1, 1]} : vector<16x96xf32> to vector<16x32xf32>
    %14 = vector.extract_strided_slice %11 {offsets = [0, 0], sizes = [8, 32], strides = [1, 1]} : vector<16x32xf32> to vector<8x32xf32>
    %15 = vector.extract_strided_slice %11 {offsets = [0, 0], sizes = [8, 32], strides = [1, 1]} : vector<16x32xf32> to vector<8x32xf32>
    %16 = vector.extract_strided_slice %11 {offsets = [0, 0], sizes = [8, 32], strides = [1, 1]} : vector<16x32xf32> to vector<8x32xf32>
    %17 = vector.extract_strided_slice %11 {offsets = [0, 0], sizes = [8, 32], strides = [1, 1]} : vector<16x32xf32> to vector<8x32xf32>
    %18 = vector.extract_strided_slice %11 {offsets = [8, 0], sizes = [8, 32], strides = [1, 1]} : vector<16x32xf32> to vector<8x32xf32>
    %19 = vector.extract_strided_slice %11 {offsets = [8, 0], sizes = [8, 32], strides = [1, 1]} : vector<16x32xf32> to vector<8x32xf32>
    %20 = vector.extract_strided_slice %11 {offsets = [8, 0], sizes = [8, 32], strides = [1, 1]} : vector<16x32xf32> to vector<8x32xf32>
    %21 = vector.extract_strided_slice %11 {offsets = [8, 0], sizes = [8, 32], strides = [1, 1]} : vector<16x32xf32> to vector<8x32xf32>
    %22 = tpu.concatenate %14, %15, %16, %17, %18, %19, %20, %21 in 0 : vector<8x32xf32>, vector<8x32xf32>, vector<8x32xf32>, vector<8x32xf32>, vector<8x32xf32>, vector<8x32xf32>, vector<8x32xf32>, vector<8x32xf32> -> vector<64x32xf32>
    %23 = arith.mulf %22, %4 : vector<64x32xf32>
    %cst_7 = arith.constant dense<0.000000e+00> : vector<64x16xf32>
    %24 = tpu.matmul %23, %12, %cst_7 {dimension_numbers = #tpu.dot_dimension_numbers<[1], [1], [0], [0], [0, 0, 1, 0], [], []>} : vector<64x32xf32>, vector<16x32xf32>, vector<64x16xf32> -> vector<64x16xf32>
    %25 = arith.addf %24, %2 : vector<64x16xf32>
    %cst_8 = arith.constant dense<0xFF800000> : vector<64xf32>
    %26 = vector.multi_reduction <maximumf>, %25, %cst_8 [1] : vector<64x16xf32> to vector<64xf32>
    %27 = vector.shape_cast %26 : vector<64xf32> to vector<64x1xf32>
    %28 = vector.broadcast %27 : vector<64x1xf32> to vector<64x16xf32>
    %29 = arith.subf %25, %28 : vector<64x16xf32>
    %30 = math.exp %29 : vector<64x16xf32>
    %31 = arith.mulf %30, %3 : vector<64x16xf32>
    %cst_9 = arith.constant dense<0.000000e+00> : vector<64xf32>
    %32 = vector.multi_reduction <add>, %31, %cst_9 [1] : vector<64x16xf32> to vector<64xf32>
    %33 = vector.shape_cast %32 : vector<64xf32> to vector<64x1xf32>
    %34 = vector.broadcast %33 : vector<64x1xf32> to vector<64x16xf32>
    %35 = arith.divf %31, %34 : vector<64x16xf32>
    %36 = tpu.concatenate %13, %5 in 1 : vector<16x32xf32>, vector<16x8xf32> -> vector<16x40xf32>
    %cst_10 = arith.constant dense<0.000000e+00> : vector<64x40xf32>
    %37 = tpu.matmul %35, %36, %cst_10 {dimension_numbers = #tpu.dot_dimension_numbers<[1], [0], [0], [1], [0, 0, 1, 1], [], []>} : vector<64x16xf32>, vector<16x40xf32>, vector<64x40xf32> -> vector<64x40xf32>
    %38 = vector.extract_strided_slice %37 {offsets = [0, 0], sizes = [64, 32], strides = [1, 1]} : vector<64x40xf32> to vector<64x32xf32>
    %39 = arith.mulf %38, %4 : vector<64x32xf32>
    %40 = vector.extract_strided_slice %37 {offsets = [0, 32], sizes = [64, 8], strides = [1, 1]} : vector<64x40xf32> to vector<64x8xf32>
    %41 = vector.extract_strided_slice %39 {offsets = [0, 0], sizes = [8, 32], strides = [1, 1]} : vector<64x32xf32> to vector<8x32xf32>
    %42 = vector.extract_strided_slice %39 {offsets = [8, 0], sizes = [8, 32], strides = [1, 1]} : vector<64x32xf32> to vector<8x32xf32>
    %43 = arith.addf %41, %42 : vector<8x32xf32>
    %44 = vector.extract_strided_slice %39 {offsets = [16, 0], sizes = [8, 32], strides = [1, 1]} : vector<64x32xf32> to vector<8x32xf32>
    %45 = arith.addf %43, %44 : vector<8x32xf32>
    %46 = vector.extract_strided_slice %39 {offsets = [24, 0], sizes = [8, 32], strides = [1, 1]} : vector<64x32xf32> to vector<8x32xf32>
    %47 = arith.addf %45, %46 : vector<8x32xf32>
    %48 = vector.extract_strided_slice %39 {offsets = [32, 0], sizes = [8, 32], strides = [1, 1]} : vector<64x32xf32> to vector<8x32xf32>
    %49 = vector.extract_strided_slice %39 {offsets = [40, 0], sizes = [8, 32], strides = [1, 1]} : vector<64x32xf32> to vector<8x32xf32>
    %50 = arith.addf %48, %49 : vector<8x32xf32>
    %51 = vector.extract_strided_slice %39 {offsets = [48, 0], sizes = [8, 32], strides = [1, 1]} : vector<64x32xf32> to vector<8x32xf32>
    %52 = arith.addf %50, %51 : vector<8x32xf32>
    %53 = vector.extract_strided_slice %39 {offsets = [56, 0], sizes = [8, 32], strides = [1, 1]} : vector<64x32xf32> to vector<8x32xf32>
    %54 = arith.addf %52, %53 : vector<8x32xf32>
    %55 = tpu.concatenate %47, %54 in 0 : vector<8x32xf32>, vector<8x32xf32> -> vector<16x32xf32>
    %c0_11 = arith.constant 0 : index
    %c0_12 = arith.constant 0 : index
    %56 = vector.load %arg2[%c0_11, %c0_12] : memref<32x32xf32, #tpu.memory_space<vmem>>, vector<32x32xf32>
    %cst_13 = arith.constant dense<0.000000e+00> : vector<16x32xf32>
    %57 = tpu.matmul %55, %56, %cst_13 {dimension_numbers = #tpu.dot_dimension_numbers<[1], [0], [0], [1], [0, 0, 1, 1], [], []>} : vector<16x32xf32>, vector<32x32xf32>, vector<16x32xf32> -> vector<16x32xf32>
    %c1 = arith.constant 1 : index
    %c0_14 = arith.constant 0 : index
    %58 = vector.load %arg5[%c1, %c0_14] : memref<8x96xf32, #tpu.memory_space<vmem>>, vector<1x32xf32>
    %59 = vector.broadcast %58 : vector<1x32xf32> to vector<16x32xf32>
    %60 = arith.addf %57, %59 : vector<16x32xf32>
    %61 = arith.addf %0, %60 : vector<16x32xf32>
    %cst_15 = arith.constant dense<0.000000e+00> : vector<16xf32>
    %62 = vector.multi_reduction <add>, %61, %cst_15 [1] : vector<16x32xf32> to vector<16xf32>
    %63 = vector.shape_cast %62 : vector<16xf32> to vector<16x1xf32>
    %cst_16 = arith.constant 3.200000e+01 : f32
    %64 = vector.broadcast %cst_16 : f32 to vector<16x1xf32>
    %65 = arith.divf %63, %64 : vector<16x1xf32>
    %66 = vector.broadcast %65 : vector<16x1xf32> to vector<16x32xf32>
    %67 = arith.subf %61, %66 : vector<16x32xf32>
    %68 = arith.mulf %67, %67 : vector<16x32xf32>
    %cst_17 = arith.constant dense<0.000000e+00> : vector<16xf32>
    %69 = vector.multi_reduction <add>, %68, %cst_17 [1] : vector<16x32xf32> to vector<16xf32>
    %70 = vector.shape_cast %69 : vector<16xf32> to vector<16x1xf32>
    %cst_18 = arith.constant 3.200000e+01 : f32
    %71 = vector.broadcast %cst_18 : f32 to vector<16x1xf32>
    %72 = arith.divf %70, %71 : vector<16x1xf32>
    %73 = vector.broadcast %65 : vector<16x1xf32> to vector<16x32xf32>
    %74 = arith.subf %61, %73 : vector<16x32xf32>
    %cst_19 = arith.constant 9.99999974E-6 : f32
    %75 = vector.broadcast %cst_19 : f32 to vector<16x1xf32>
    %76 = arith.addf %72, %75 : vector<16x1xf32>
    %77 = math.rsqrt %76 : vector<16x1xf32>
    %78 = vector.broadcast %77 : vector<16x1xf32> to vector<16x32xf32>
    %79 = arith.mulf %74, %78 : vector<16x32xf32>
    %c4 = arith.constant 4 : index
    %c0_20 = arith.constant 0 : index
    %80 = vector.load %arg5[%c4, %c0_20] : memref<8x96xf32, #tpu.memory_space<vmem>>, vector<1x32xf32>
    %81 = vector.broadcast %80 : vector<1x32xf32> to vector<16x32xf32>
    %82 = arith.mulf %79, %81 : vector<16x32xf32>
    %c5 = arith.constant 5 : index
    %c0_21 = arith.constant 0 : index
    %83 = vector.load %arg5[%c5, %c0_21] : memref<8x96xf32, #tpu.memory_space<vmem>>, vector<1x32xf32>
    %84 = vector.broadcast %83 : vector<1x32xf32> to vector<16x32xf32>
    %85 = arith.addf %82, %84 : vector<16x32xf32>
    %c0_22 = arith.constant 0 : index
    %c0_23 = arith.constant 0 : index
    %86 = vector.load %arg3[%c0_22, %c0_23] : memref<32x64xf32, #tpu.memory_space<vmem>>, vector<32x64xf32>
    %cst_24 = arith.constant dense<0.000000e+00> : vector<16x64xf32>
    %87 = tpu.matmul %85, %86, %cst_24 {dimension_numbers = #tpu.dot_dimension_numbers<[1], [0], [0], [1], [0, 0, 1, 1], [], []>} : vector<16x32xf32>, vector<32x64xf32>, vector<16x64xf32> -> vector<16x64xf32>
    %c2 = arith.constant 2 : index
    %c0_25 = arith.constant 0 : index
    %88 = vector.load %arg5[%c2, %c0_25] : memref<8x96xf32, #tpu.memory_space<vmem>>, vector<1x64xf32>
    %89 = vector.broadcast %88 : vector<1x64xf32> to vector<16x64xf32>
    %90 = arith.addf %87, %89 : vector<16x64xf32>
    %cst_26 = arith.constant 0.000000e+00 : f32
    %91 = vector.broadcast %cst_26 : f32 to vector<16x64xf32>
    %92 = arith.maximumf %90, %91 : vector<16x64xf32>
    %c0_27 = arith.constant 0 : index
    %c0_28 = arith.constant 0 : index
    %93 = vector.load %arg4[%c0_27, %c0_28] : memref<64x32xf32, #tpu.memory_space<vmem>>, vector<64x32xf32>
    %cst_29 = arith.constant dense<0.000000e+00> : vector<16x32xf32>
    %94 = tpu.matmul %92, %93, %cst_29 {dimension_numbers = #tpu.dot_dimension_numbers<[1], [0], [0], [1], [0, 0, 1, 1], [], []>} : vector<16x64xf32>, vector<64x32xf32>, vector<16x32xf32> -> vector<16x32xf32>
    %c3 = arith.constant 3 : index
    %c0_30 = arith.constant 0 : index
    %95 = vector.load %arg5[%c3, %c0_30] : memref<8x96xf32, #tpu.memory_space<vmem>>, vector<1x32xf32>
    %96 = vector.broadcast %95 : vector<1x32xf32> to vector<16x32xf32>
    %97 = arith.addf %94, %96 : vector<16x32xf32>
    %98 = arith.addf %85, %97 : vector<16x32xf32>
    %cst_31 = arith.constant dense<0.000000e+00> : vector<16xf32>
    %99 = vector.multi_reduction <add>, %98, %cst_31 [1] : vector<16x32xf32> to vector<16xf32>
    %100 = vector.shape_cast %99 : vector<16xf32> to vector<16x1xf32>
    %cst_32 = arith.constant 3.200000e+01 : f32
    %101 = vector.broadcast %cst_32 : f32 to vector<16x1xf32>
    %102 = arith.divf %100, %101 : vector<16x1xf32>
    %103 = vector.broadcast %102 : vector<16x1xf32> to vector<16x32xf32>
    %104 = arith.subf %98, %103 : vector<16x32xf32>
    %105 = arith.mulf %104, %104 : vector<16x32xf32>
    %cst_33 = arith.constant dense<0.000000e+00> : vector<16xf32>
    %106 = vector.multi_reduction <add>, %105, %cst_33 [1] : vector<16x32xf32> to vector<16xf32>
    %107 = vector.shape_cast %106 : vector<16xf32> to vector<16x1xf32>
    %cst_34 = arith.constant 3.200000e+01 : f32
    %108 = vector.broadcast %cst_34 : f32 to vector<16x1xf32>
    %109 = arith.divf %107, %108 : vector<16x1xf32>
    %110 = vector.broadcast %102 : vector<16x1xf32> to vector<16x32xf32>
    %111 = arith.subf %98, %110 : vector<16x32xf32>
    %cst_35 = arith.constant 9.99999974E-6 : f32
    %112 = vector.broadcast %cst_35 : f32 to vector<16x1xf32>
    %113 = arith.addf %109, %112 : vector<16x1xf32>
    %114 = math.rsqrt %113 : vector<16x1xf32>
    %115 = vector.broadcast %114 : vector<16x1xf32> to vector<16x32xf32>
    %116 = arith.mulf %111, %115 : vector<16x32xf32>
    %c6 = arith.constant 6 : index
    %c0_36 = arith.constant 0 : index
    %117 = vector.load %arg5[%c6, %c0_36] : memref<8x96xf32, #tpu.memory_space<vmem>>, vector<1x32xf32>
    %118 = vector.broadcast %117 : vector<1x32xf32> to vector<16x32xf32>
    %119 = arith.mulf %116, %118 : vector<16x32xf32>
    %c7 = arith.constant 7 : index
    %c0_37 = arith.constant 0 : index
    %120 = vector.load %arg5[%c7, %c0_37] : memref<8x96xf32, #tpu.memory_space<vmem>>, vector<1x32xf32>
    %121 = vector.broadcast %120 : vector<1x32xf32> to vector<16x32xf32>
    %122 = arith.addf %119, %121 : vector<16x32xf32>
    %cst_38 = arith.constant 0.000000e+00 : f32
    %123 = vector.broadcast %cst_38 : f32 to vector<16x96xf32>
    %124 = tpu.concatenate %122, %123 in 1 : vector<16x32xf32>, vector<16x96xf32> -> vector<16x128xf32>
    %c0_39 = arith.constant 0 : index
    %c0_40 = arith.constant 0 : index
    %125 = vector.load %arg7[%c0_39, %c0_40] : memref<80x128xf32, #tpu.memory_space<vmem>>, vector<16x128xf32>
    tpu.vector_store %arg7[%c0_39, %c0_40], %124 {strides = array<i32>} : memref<80x128xf32, #tpu.memory_space<vmem>>, vector<16x128xf32>,
    %cst_41 = arith.constant 0.000000e+00 : f32
    %126 = vector.broadcast %cst_41 : f32 to vector<64x120xf32>
    %127 = tpu.concatenate %40, %126 in 1 : vector<64x8xf32>, vector<64x120xf32> -> vector<64x128xf32>
    %c16 = arith.constant 16 : index
    %c0_42 = arith.constant 0 : index
    %128 = vector.load %arg7[%c16, %c0_42] : memref<80x128xf32, #tpu.memory_space<vmem>>, vector<64x128xf32>
    tpu.vector_store %arg7[%c16, %c0_42], %127 {strides = array<i32>} : memref<80x128xf32, #tpu.memory_space<vmem>>, vector<64x128xf32>,
    return
  }
}

</mosaic_0001>

<bundles_post_ra>
// kernel: encoder_layer.1
= control target key start
LH: loop header
LB: loop body
LE: loop exit
PB: predicated region body
PF: predicated region fallthrough
CT: control target
= control target key end

     0   :  { %12 = vsyncpa [#allocation3], 0  ;;  %s1717_s0 = inlined_call_operand.hbm [shape: f32[16,32], index: 0, kind: input, shape index: {}]   ;;  %s1718_s1 = inlined_call_operand.vmem [shape: f32[32,96], index: 1, kind: input, shape index: {}]   ;;  %s1719_s2 = inlined_call_operand.hbm [shape: f32[32,32], index: 2, kind: input, shape index: {}]   ;;  %s1720_s3 = inlined_call_operand.hbm [shape: f32[32,64], index: 3, kind: input, shape index: {}]   ;;  %s1721_s4 = inlined_call_operand.vmem [shape: f32[64,32], index: 4, kind: input, shape index: {}]   ;;  %s1722_s5 = inlined_call_operand.vmem [shape: f32[8,96], index: 5, kind: input, shape index: {}]   ;;  %s1723_s6 = inlined_call_operand.vmem [shape: f32[64,72], index: 6, kind: input, shape index: {}]   ;;  %s1724_s7 = inlined_call_operand.vmem [shape: f32[80,128], index: 7, kind: output, shape index: {}]  }
   0x1   :  { %13 = vsyncpa [#allocation5], 0  ;;  %s1322_s24 = smov [#allocation4]   ;;  %s1323_s26 = smov [#allocation2]  }
   0x2   :  { %s33_s25 = sshll.u32 %s1322_s24, 4  ;;  %s19_s27 = sshll.u32 %s1323_s26, 4  ;;  %s34_s25 = int_to_ptr.vmem [resolvable:$true] %s33_s25  ;;  %s20_s27 = int_to_ptr.vmem [resolvable:$true] %s19_s27 }
   0x3   :  { %s1266_s28 = scalar_lea.vmem %s34_s25, 512  ;;  %p1271_p1 = scmp.lt.s32.totalorder %s34_s25, %s34_s25 }
   0x4   :  { %p1267_p0 = scmp.ne.s32.totalorder %s34_s25, %s1266_s28  ;;  %p1272_p2 = scmp.lt.s32.totalorder %s1266_s28, %s1266_s28 }
   0x6   :  { %p1273_p3 = por %p1272_p2, %p1271_p1 }
   0x8   :  { %p1274_p4 = pnand %p1273_p3, %p1267_p0 }
   0xa   :  { %1277 = shalt.err (!%p1274_p4)
}
   0xb   :  { %s1324_s29 = smov 128   ;;  %s1325_s30 = smov 8  }
   0xc   :  { %39 = dma.hbm_to_vmem [thread:$0]  %s1719_s2, 512, %s34_s25, [#allocation5], %s1324_s29, %s1324_s29, %s1325_s30  }
   0xd   :  { %s1286_s10 = scalar_lea.vmem %s20_s27, 256  ;;  %p1291_p6 = scmp.lt.s32.totalorder %s20_s27, %s20_s27 }
   0xe   :  { %p1287_p5 = scmp.ne.s32.totalorder %s20_s27, %s1286_s10  ;;  %p1292_p7 = scmp.lt.s32.totalorder %s1286_s10, %s1286_s10 }
  0x10   :  { %p1293_p8 = por %p1292_p7, %p1291_p6 }
  0x12   :  { %p1294_p9 = pnand %p1293_p8, %p1287_p5 }
  0x14   :  { %1297 = shalt.err (!%p1294_p9)
}
  0x15   :  { %25 = dma.hbm_to_vmem [thread:$0]  %s1717_s0, 256, %s20_s27, [#allocation3], %s1324_s29, %s1324_s29, %s1325_s30  }
  0x16   :  { %s1326_s13 = smov [#allocation6]  }
  0x17   :  { %s45_s14 = sshll.u32 %s1326_s13, 4  ;;  %s46_s14 = int_to_ptr.vmem [resolvable:$true] %s45_s14 }
  0x18   :  { %s1306_s15 = scalar_lea.vmem %s46_s14, 512  ;;  %p1311_p11 = scmp.lt.s32.totalorder %s46_s14, %s46_s14 }
  0x19   :  { %p1307_p10 = scmp.ne.s32.totalorder %s46_s14, %s1306_s15  ;;  %p1312_p12 = scmp.lt.s32.totalorder %s1306_s15, %s1306_s15 }
  0x1b   :  { %p1313_p13 = por %p1312_p12, %p1311_p11 }
  0x1d   :  { %p1314_p0 = pnand %p1313_p13, %p1307_p10 }
  0x1f   :  { %1317 = shalt.err (!%p1314_p0)
}
  0x20   :  { %51 = dma.hbm_to_vmem [thread:$0]  %s1720_s3, 512, %s46_s14, [#allocation5], %s1324_s29, %s1324_s29, %s1325_s30  }
  0x21   :  { %1318 = dma.done.wait [#allocation3], 256  }
  0x22   :  { %1319 = vsyncadd [#allocation3], 4294967040 }
  0x23   :  { %1320 = dma.done.wait [#allocation5], 1024  }
  0x24   :  { %1321 = vsyncadd [#allocation5], 4294966272  ;;  %vm86_vm0 = vcmask 261120   ;;  %v80_v0 = vld [vmem:[%s1718_s1 + $0x18] sm:$0xff]  ;;  %v79_v1 = vld [vmem:[%s1718_s1 + $0x10] sm:$0xff]  ;;  %s1327_s23 = smov 96  }
  0x25   :  { %1122 = vmatprep.subr.mxu0 %v80_v0  ;;  %v1385_v2 = vld [vmem:[#allocation2] sm:$0xff]  ;;  %v78_v3 = vld [vmem:[%s1718_s1 + $0x8] sm:$0xff]  ;;  %v1414_v8 = vld [vmem:[%s1723_s6 + $0x10] sm:$0xff]  ;;  %s1328_s12 = smov 112   ;;  %vm347_vm1 = vcmask 130048   ;;  %vm857_vm2 = vcmask 523264  }
  0x26   :  { %1123 = vmatpush3.msra.mxu0 %v80_v0  ;;  %1130 = vmatprep.mubr.msk.f32.mxu0 %vm86_vm0, %v1385_v2  ;;  %v1395_v4 = vld [vmem:[%s1723_s6 + $0x8] sm:$0xff]  ;;  %v77_v5 = vld [vmem:[%s1718_s1] sm:$0xff]  ;;  %v72_v18 = vld [vmem:[%s1723_s6 + $0x18] sm:$0xff]  ;;  %vm1017_vm3 = vcmask 64512  }
  0x27   :  { %1124 = vmatprep.subr.mxu0 %v79_v1  ;;  %178 = vrot.lane.b32.xlu1 %v1395_v4, %s1327_s23  ;;  %v1405_v6 = vld [vmem:[%s1723_s6] sm:$0xff]  ;;  %v1407_v7 = vld [vmem:[#allocation2 + $0x8] sm:$0xff]  ;;  %v1460_v20 = vld [vmem:[%s1723_s6 + $0x38] sm:$0xff] }
  0x28   :  { %1125 = vmatpush3.msra.mxu0 %v79_v1  ;;  %v1423_v9 = vld [vmem:[%s1723_s6 + $0x20] sm:$0xff]  ;;  %v74_v19 = vld [vmem:[%s1723_s6 + $0x28] sm:$0xff]  ;;  %v1517_v51 = vld [vmem:[%s1723_s6 + $0x30] sm:$0xff]  ;;  %s1329_s6 = smov 64  }
  0x29   :  { %1126 = vmatprep.subr.mxu0 %v78_v3  ;;  %v1040_v11 = vld [vmem:[%s1722_s5] ss:$0 sm:$0xff] }
  0x2a   :  { %1127 = vmatpush3.msra.mxu0 %v78_v3 }
  0x2b   :  { %1128 = vmatprep.subr.mxu0 %v77_v5  ;;  %176 = vrot.lane.b32.xlu1 %v1405_v6, %s1327_s23 }
  0x2c   :  { %1129 = vmatpush3.msra.mxu0 %v77_v5 }
  0x2d   :  { %1131 = vmatmul.mubr.msk.f32.vlgmr.msra.gmra.mxu0 %vm86_vm0, %v1407_v7 }
  0x2f   :  { %180 = vrot.lane.b32.xlu1 %v1414_v8, %s1327_s23 }
  0x33   :  { %184 = vrot.lane.b32.xlu1 %v1423_v9, %s1327_s23 }
  0x37   :  { %398 = vrot.lane.b32.xlu1 %v1395_v4, %s1328_s12 }
  0x3b   :  { %400 = vrot.lane.b32.xlu1 %v1414_v8, %s1328_s12 }
  0x3f   :  { %404 = vrot.lane.b32.xlu1 %v1423_v9, %s1328_s12 }
  0x99   :  { %v1427_v10 = vpop.permute.xlu1 %178 }
  0x9d   :  { %v1438_v16 = vpop.permute.xlu1 %176 }
  0xa1   :  { %v1474_v23 = vpop.permute.xlu1 %180 }
  0xa5   :  { %v1489_v28 = vpop.permute.xlu1 %184 }
  0xa9   :  { %v399_v60 = vpop.permute.xlu1 %398 }
  0xad   :  { %v401_v62 = vpop.permute.xlu1 %400 }
  0xb1   :  { %v405_v0 = vpop.permute.xlu1 %404 }
  0xed   :  { %v1132_v12 = vpop.f32.mrf.mxu0 }
  0xee   :  { %v1432_v13 = vadd.f32 %v1132_v12, %v1040_v11 }
  0xef   :  { %v159_v14 = vpop.f32.mrf.mxu0 }
  0xf0   :  { %v1434_v15 = vadd.f32 %v1040_v11, %v159_v14  ;;  %212 = vrot.lane.b32.xlu0 %v1432_v13, %s1327_s23  ;;  %v204_v31 = vmul.f32 %v1489_v28, %v1432_v13 }
  0xf2   :  { %v200_v17 = vmul.f32 %v1438_v16, %v1434_v15  ;;  %v201_v24 = vmul.f32 %v1427_v10, %v1434_v15  ;;  %v202_v27 = vmul.f32 %v1474_v23, %v1434_v15 }
  0xf4   :  { %210 = vrot.lane.b32.xlu0 %v1434_v15, %s1327_s23  ;;  %1137 = vmatprep.mubr.msk.f32.mxu1 %vm86_vm0, %v200_v17 }
  0xf8   :  { %182 = vrot.lane.b32.xlu0 %v72_v18, %s1327_s23 }
  0xfc   :  { %186 = vrot.lane.b32.xlu0 %v74_v19, %s1327_s23 }
 0x100   :  { %190 = vrot.lane.b32.xlu0 %v1460_v20, %s1327_s23 }
 0x104   :  { %396 = vrot.lane.b32.xlu0 %v1405_v6, %s1328_s12 }
 0x108   :  { %402 = vrot.lane.b32.xlu0 %v72_v18, %s1328_s12 }
 0x10c   :  { %406 = vrot.lane.b32.xlu0 %v74_v19, %s1328_s12 }
 0x162   :  { %v213_v21 = vpop.permute.xlu0 %212 }
 0x163   :  { %1133 = vmatprep.subr.msk.mxu0 %vm86_vm0, %v213_v21  ;;  %1206 = vmatprep.subr.msk.mxu1 %vm86_vm0, %v213_v21 }
 0x164   :  { %1134 = vmatpush3.xpose.msk.msra.mxu0 %vm86_vm0, %v213_v21  ;;  %1208 = vmatpush3.xpose.msk.msra.mxu1 %vm86_vm0, %v213_v21 }
 0x166   :  { %v211_v22 = vpop.permute.xlu0 %210 }
 0x167   :  { %1135 = vmatprep.subr.msk.mxu0 %vm86_vm0, %v211_v22  ;;  %1207 = vmatprep.subr.msk.mxu1 %vm86_vm0, %v211_v22 }
 0x168   :  { %1136 = vmatpush3.xpose.msk.msra.mxu0 %vm86_vm0, %v211_v22  ;;  %1209 = vmatpush3.xpose.msk.msra.mxu1 %vm86_vm0, %v211_v22 }
 0x16a   :  { %v1482_v25 = vpop.permute.xlu0 %182 }
 0x16b   :  { %v203_v26 = vmul.f32 %v1482_v25, %v1434_v15  ;;  %1138 = vmatmul.mubr.msk.f32.vlgmr.msra.gmra.mxu0 %vm86_vm0, %v201_v24 }
 0x16d   :  { %1141 = vmatmul.mubr.msk.f32.vlgmr.msra.gmra.mxu1 %vm86_vm0, %v203_v26 }
 0x16e   :  { %v1492_v29 = vpop.permute.xlu0 %186  ;;  %1140 = vmatprep.mubr.msk.f32.mxu1 %vm86_vm0, %v202_v27 }
 0x16f   :  { %v205_v30 = vmul.f32 %v1492_v29, %v1432_v13 }
 0x171   :  { %1144 = vmatmul.mubr.msk.f32.gmra.mxu1 %vm86_vm0, %v205_v30 }
 0x172   :  { %v1500_v32 = vpop.permute.xlu0 %190  ;;  %1143 = vmatprep.mubr.msk.f32.mxu1 %vm86_vm0, %v204_v31 }
 0x173   :  { %v207_v33 = vmul.f32 %v1500_v32, %v1432_v13 }
 0x175   :  { %1147 = vmatmul.mubr.msk.f32.gmra.mxu1 %vm86_vm0, %v207_v33 }
 0x176   :  { %v397_v59 = vpop.permute.xlu0 %396 }
 0x17a   :  { %v403_v61 = vpop.permute.xlu0 %402 }
 0x17e   :  { %v407_v63 = vpop.permute.xlu0 %406 }
 0x22b   :  { %v1139_v34 = vpop.f32.mrf.mxu0 }
 0x22c   :  { %v314_v35 = vadd.f32 %v1139_v34, %v1395_v4 }
 0x22d   :  { %v308_v36 = vpop.f32.mrf.mxu0  ;;  %v1142_v37 = vpop.f32.mrf.mxu1 }
 0x22e   :  { %v324_v38 = vadd.f32 %v1142_v37, %v72_v18  ;;  %v351_v39 = vsel %vm347_vm1, %v314_v35, -inf  ;;  %v309_v41 = vadd.f32 %v308_v36, %v1405_v6 }
 0x22f   :  { %v318_v40 = vpop.f32.mrf.mxu1  ;;  %352 = vmax.xlane.f32.xlu0 %v351_v39 }
 0x230   :  { %v319_v42 = vadd.f32 %v318_v40, %v1414_v8  ;;  %v357_v43 = vsel %vm347_vm1, %v324_v38, -inf  ;;  %v348_v49 = vsel %vm347_vm1, %v309_v41, -inf }
 0x231   :  { %358 = vmax.xlane.f32.xlu1 %v357_v43  ;;  %v1145_v44 = vpop.f32.mrf.mxu1 }
 0x232   :  { %v354_v45 = vsel %vm347_vm1, %v319_v42, -inf  ;;  %v334_v47 = vadd.f32 %v1145_v44, %v74_v19 }
 0x233   :  { %v328_v46 = vpop.f32.mrf.mxu1  ;;  %355 = vmax.xlane.f32.xlu0 %v354_v45 }
 0x234   :  { %v329_v48 = vadd.f32 %v328_v46, %v1423_v9  ;;  %v363_v56 = vsel %vm347_vm1, %v334_v47, -inf }
 0x235   :  { %v1148_v50 = vpop.f32.mrf.mxu1  ;;  %349 = vmax.xlane.f32.xlu1 %v348_v49 }
 0x236   :  { %v360_v52 = vsel %vm347_vm1, %v329_v48, -inf  ;;  %v344_v54 = vadd.f32 %v1148_v50, %v1460_v20 }
 0x237   :  { %v338_v53 = vpop.f32.mrf.mxu1  ;;  %361 = vmax.xlane.f32.xlu0 %v360_v52 }
 0x238   :  { %v339_v55 = vadd.f32 %v338_v53, %v1517_v51  ;;  %v369_v58 = vsel %vm347_vm1, %v344_v54, -inf }
 0x239   :  { %364 = vmax.xlane.f32.xlu1 %v363_v56 }
 0x23a   :  { %v366_v57 = vsel %vm347_vm1, %v339_v55, -inf }
 0x23b   :  { %367 = vmax.xlane.f32.xlu0 %v366_v57 }
 0x23d   :  { %370 = vmax.xlane.f32.xlu1 %v369_v58 }
 0x24e   :  { %408 = vrot.lane.b32.xlu1 %v1517_v51, %s1328_s12 }
 0x251   :  { %410 = vrot.lane.b32.xlu0 %v1460_v20, %s1328_s12 }
 0x2b8   :  { %v353_v1 = vpop.xlane.xlu0 %352 }
 0x2b9   :  { %v373_v3 = vsub.f32 %v314_v35, %v353_v1 }
 0x2ba   :  { %v359_v4 = vpop.xlane.xlu1 %358 }
 0x2bb   :  { %v382_v5 = vmul.f32 1.442695, %v373_v3  ;;  %v375_v6 = vsub.f32 %v324_v38, %v359_v4 }
 0x2bc   :  { %v356_v8 = vpop.xlane.xlu0 %355 }
 0x2bd   :  { %1218 = vpow2.f32 %v382_v5  ;;  %v386_v9 = vmul.f32 1.442695, %v375_v6  ;;  %v374_v11 = vsub.f32 %v319_v42, %v356_v8 }
 0x2be   :  { %v350_v12 = vpop.xlane.xlu1 %349 }
 0x2bf   :  { %1220 = vpow2.f32 %v386_v9  ;;  %v384_v14 = vmul.f32 1.442695, %v374_v11  ;;  %v372_v17 = vsub.f32 %v309_v41, %v350_v12 }
 0x2c0   :  { %v362_v18 = vpop.xlane.xlu0 %361 }
 0x2c1   :  { %1222 = vpow2.f32 %v384_v14  ;;  %v380_v19 = vmul.f32 1.442695, %v372_v17  ;;  %v376_v20 = vsub.f32 %v329_v48, %v362_v18 }
 0x2c2   :  { %v365_v21 = vpop.xlane.xlu1 %364 }
 0x2c3   :  { %1224 = vpow2.f32 %v380_v19  ;;  %v388_v22 = vmul.f32 1.442695, %v376_v20  ;;  %v377_v24 = vsub.f32 %v334_v47, %v365_v21 }
 0x2c4   :  { %v368_v26 = vpop.xlane.xlu0 %367 }
 0x2c5   :  { %1226 = vpow2.f32 %v388_v22  ;;  %v390_v27 = vmul.f32 1.442695, %v377_v24  ;;  %v378_v30 = vsub.f32 %v339_v55, %v368_v26 }
 0x2c6   :  { %v371_v31 = vpop.xlane.xlu1 %370 }
 0x2c7   :  { %1228 = vpow2.f32 %v390_v27  ;;  %v392_v33 = vmul.f32 1.442695, %v378_v30  ;;  %v379_v34 = vsub.f32 %v344_v54, %v371_v31 }
 0x2c8   :  { %v411_v56 = vpop.permute.xlu0 %410 }
 0x2c9   :  { %1230 = vpow2.f32 %v392_v33  ;;  %v394_v35 = vmul.f32 1.442695, %v379_v34 }
 0x2ca   :  { %v1219_v36 = vpop.eup %1218  ;;  %v409_v52 = vpop.permute.xlu1 %408 }
 0x2cb   :  { %1232 = vpow2.f32 %v394_v35  ;;  %v1529_v37 = vmul.f32 %v1219_v36, %v399_v60 }
 0x2cc   :  { %v1221_v38 = vpop.eup %1220 }
 0x2cd   :  { %v431_v39 = vsel %vm347_vm1, %v1529_v37, 0.0  ;;  %v1533_v40 = vmul.f32 %v1221_v38, %v403_v61  ;;  %v621_v38 = vld [vmem:[#allocation4 + $0x10] sm:$0xff] }
 0x2ce   :  { %v1223_v41 = vpop.eup %1222  ;;  %432 = vadd.xlane.f32.xlu0 %v431_v39  ;;  %v620_v39 = vld [vmem:[#allocation4 + $0x8] sm:$0xff] }
 0x2cf   :  { %v437_v42 = vsel %vm347_vm1, %v1533_v40, 0.0  ;;  %v1537_v43 = vmul.f32 %v1223_v41, %v401_v62 }
 0x2d0   :  { %v1225_v44 = vpop.eup %1224  ;;  %438 = vadd.xlane.f32.xlu1 %v437_v42 }
 0x2d1   :  { %v434_v45 = vsel %vm347_vm1, %v1537_v43, 0.0  ;;  %v420_v46 = vmul.f32 %v1225_v44, %v397_v59 }
 0x2d2   :  { %v1227_v47 = vpop.eup %1226  ;;  %435 = vadd.xlane.f32.xlu0 %v434_v45 }
 0x2d3   :  { %v428_v48 = vsel %vm347_vm1, %v420_v46, 0.0  ;;  %v424_v49 = vmul.f32 %v1227_v47, %v405_v0 }
 0x2d4   :  { %v1229_v50 = vpop.eup %1228  ;;  %429 = vadd.xlane.f32.xlu1 %v428_v48 }
 0x2d5   :  { %v440_v53 = vsel %vm347_vm1, %v424_v49, 0.0  ;;  %v425_v54 = vmul.f32 %v1229_v50, %v407_v63 }
 0x2d6   :  { %v1231_v55 = vpop.eup %1230  ;;  %441 = vadd.xlane.f32.xlu0 %v440_v53 }
 0x2d7   :  { %v426_v57 = vmul.f32 %v1231_v55, %v409_v52  ;;  %v443_v58 = vsel %vm347_vm1, %v425_v54, 0.0 }
 0x2d8   :  { %v1233_v60 = vpop.eup %1232  ;;  %444 = vadd.xlane.f32.xlu1 %v443_v58 }
 0x2d9   :  { %v427_v59 = vmul.f32 %v1233_v60, %v411_v56  ;;  %v446_v61 = vsel %vm347_vm1, %v426_v57, 0.0 }
 0x2da   :  { %447 = vadd.xlane.f32.xlu0 %v446_v61 }
 0x2db   :  { %v449_v62 = vsel %vm347_vm1, %v427_v59, 0.0 }
 0x2dc   :  { %450 = vadd.xlane.f32.xlu1 %v449_v62 }
 0x2ed   :  { %188 = vrot.lane.b32.xlu1 %v1517_v51, %s1327_s23 }
 0x2f0   :  { %470 = vrot.lane.b32.xlu0 %v1432_v13, %s1329_s6 }
 0x2f1   :  { %468 = vrot.lane.b32.xlu1 %v1434_v15, %s1329_s6 }
 0x357   :  { %v433_v63 = vpop.xlane.xlu0 %432 }
 0x359   :  { %v439_v0 = vpop.xlane.xlu1 %438 }
 0x35b   :  { %v436_v1 = vpop.xlane.xlu0 %435 }
 0x35d   :  { %v430_v3 = vpop.xlane.xlu1 %429 }
 0x35e   :  { %1234 = vrcp.f32 %v430_v3 }
 0x35f   :  { %1236 = vrcp.f32 %v433_v63  ;;  %v442_v4 = vpop.xlane.xlu0 %441 }
 0x360   :  { %1238 = vrcp.f32 %v436_v1 }
 0x361   :  { %v445_v5 = vpop.xlane.xlu1 %444  ;;  %1240 = vrcp.f32 %v439_v0 }
 0x362   :  { %1242 = vrcp.f32 %v442_v4 }
 0x363   :  { %v448_v6 = vpop.xlane.xlu0 %447  ;;  %1244 = vrcp.f32 %v445_v5 }
 0x364   :  { %1246 = vrcp.f32 %v448_v6 }
 0x365   :  { %v451_v8 = vpop.xlane.xlu1 %450 }
 0x366   :  { %1248 = vrcp.f32 %v451_v8 }
 0x367   :  { %v471_v51 = vpop.permute.xlu0 %470 }
 0x368   :  { %v475_v9 = vsel %vm86_vm0, %v471_v51, %v1427_v10 }
 0x369   :  { %1149 = vmatprep.subr.mxu0 %v475_v9  ;;  %v1552_v15 = vpop.permute.xlu1 %188 }
 0x36a   :  { %v206_v11 = vmul.f32 %v1552_v15, %v1432_v13  ;;  %1150 = vmatpush3.msra.mxu0 %v475_v9 }
 0x36b   :  { %v1235_v12 = vpop.eup %1234 }
 0x36c   :  { %v1237_v14 = vpop.eup %1236  ;;  %1146 = vmatprep.mubr.msk.f32.mxu0 %vm86_vm0, %v206_v11  ;;  %v453_v17 = vmul.f32 %v1235_v12, %v420_v46  ;;  %v755_v12 = vld [vmem:[#allocation6 + $0x18] sm:$0xff] }
 0x36d   :  { %v1239_v18 = vpop.eup %1238  ;;  %v469_v19 = vpop.permute.xlu1 %468  ;;  %v455_v21 = vmul.f32 %v1237_v14, %v1529_v37  ;;  %v622_v37 = vld [vmem:[#allocation4 + $0x18] sm:$0xff]  ;;  %v753_v14 = vld [vmem:[#allocation6 + $0x8] sm:$0xff] }
 0x36e   :  { %1153 = vmatprep.mubr.msk.f32.mxu0 %vm347_vm1, %v453_v17  ;;  %v474_v20 = vsel %vm86_vm0, %v469_v19, %v1438_v16  ;;  %v1241_v22 = vpop.eup %1240  ;;  %v457_v13 = vmul.f32 %v1239_v18, %v1537_v43  ;;  %1165 = vmatprep.subr.mxu1 %v622_v37  ;;  %v752_v17 = vld [vmem:[#allocation6] sm:$0xff]  ;;  %v851_v18 = vld [vmem:[%s1721_s4 + $0x38] sm:$0xff] }
 0x36f   :  { %1151 = vmatprep.subr.mxu0 %v474_v20  ;;  %v1243_v24 = vpop.eup %1242  ;;  %v459_v26 = vmul.f32 %v1241_v22, %v1533_v40  ;;  %1166 = vmatpush3.msra.mxu1 %v622_v37  ;;  %v619_v40 = vld [vmem:[#allocation4] sm:$0xff] }
 0x370   :  { %1152 = vmatpush3.msra.mxu0 %v474_v20  ;;  %v1245_v27 = vpop.eup %1244  ;;  %v461_v30 = vmul.f32 %v1243_v24, %v424_v49  ;;  %1167 = vmatprep.subr.mxu1 %v621_v38  ;;  %v850_v19 = vld [vmem:[%s1721_s4 + $0x30] sm:$0xff]  ;;  %v849_v20 = vld [vmem:[%s1721_s4 + $0x28] sm:$0xff] }
 0x371   :  { %1154 = vmatmul.mubr.msk.f32.vlgmr.msra.gmra.mxu0 %vm347_vm1, %v455_v21  ;;  %v1247_v31 = vpop.eup %1246  ;;  %v463_v33 = vmul.f32 %v1245_v27, %v425_v54  ;;  %1168 = vmatpush3.msra.mxu1 %v621_v38  ;;  %v848_v21 = vld [vmem:[%s1721_s4 + $0x20] sm:$0xff] }
 0x372   :  { %1156 = vmatprep.mubr.msk.f32.mxu0 %vm347_vm1, %v457_v13  ;;  %v465_v35 = vmul.f32 %v1247_v31, %v426_v57  ;;  %1169 = vmatprep.subr.mxu1 %v620_v39 }
 0x373   :  { %v1249_v34 = vpop.eup %1248  ;;  %1170 = vmatpush3.msra.mxu1 %v620_v39  ;;  %1176 = vmatprep.subr.mxu0 %v755_v12 }
 0x374   :  { %v467_v36 = vmul.f32 %v1249_v34, %v427_v59  ;;  %1171 = vmatprep.subr.mxu1 %v619_v40  ;;  %1177 = vmatpush3.msra.mxu0 %v755_v12 }
 0x375   :  { %1157 = vmatmul.mubr.msk.f32.gmra.mxu0 %vm347_vm1, %v459_v26  ;;  %1172 = vmatpush3.msra.mxu1 %v619_v40 }
 0x376   :  { %1159 = vmatprep.mubr.msk.f32.mxu0 %vm347_vm1, %v461_v30  ;;  %1187 = vmatprep.subr.mxu1 %v851_v18 }
 0x379   :  { %1160 = vmatmul.mubr.msk.f32.gmra.mxu0 %vm347_vm1, %v463_v33  ;;  %v1064_v33 = vld [vmem:[%s1722_s5 + $0x4] ss:$0 sm:$0xff] }
 0x37a   :  { %1162 = vmatprep.mubr.msk.f32.mxu0 %vm347_vm1, %v465_v35  ;;  %v1065_v35 = vld [vmem:[%s1722_s5 + $0x5] ss:$0 sm:$0xff] }
 0x37d   :  { %1163 = vmatmul.mubr.msk.f32.gmra.mxu0 %vm347_vm1, %v467_v36 }
 0x431   :  { %v1570_v41 = vpop.f32.mrf.mxu0 }
 0x432   :  { %v606_v45 = vmul.f32 %v1570_v41, %v1427_v10 }
 0x433   :  { %v1572_v42 = vpop.f32.mrf.mxu0 }
 0x434   :  { %v605_v43 = vmul.f32 %v1572_v42, %v1438_v16 }
 0x435   :  { %v1576_v44 = vpop.f32.mrf.mxu0 }
 0x436   :  { %v613_v47 = vadd.f32 %v606_v45, %v605_v43  ;;  %v608_v50 = vmul.f32 %v1576_v44, %v1482_v25  ;;  %v847_v45 = vld [vmem:[%s1721_s4 + $0x18] sm:$0xff] }
 0x437   :  { %v1580_v46 = vpop.f32.mrf.mxu0 }
 0x438   :  { %v607_v48 = vmul.f32 %v1580_v46, %v1474_v23 }
 0x439   :  { %v1584_v49 = vpop.f32.mrf.mxu0 }
 0x43a   :  { %v614_v52 = vadd.f32 %v613_v47, %v607_v48  ;;  %v610_v10 = vmul.f32 %v1584_v49, %v1492_v29  ;;  %v846_v47 = vld [vmem:[%s1721_s4 + $0x10] sm:$0xff]  ;;  %v845_v48 = vld [vmem:[%s1721_s4 + $0x8] sm:$0xff] }
 0x43b   :  { %v1588_v53 = vpop.f32.mrf.mxu0 }
 0x43c   :  { %v615_v16 = vadd.f32 %v614_v52, %v608_v50  ;;  %v609_v54 = vmul.f32 %v1588_v53, %v1489_v28  ;;  %v1061_v28 = vld [vmem:[%s1722_s5 + $0x1] ss:$0 sm:$0xff]  ;;  %v1066_v52 = vld [vmem:[%s1722_s5 + $0x2] ss:$0 sm:$0xff] }
 0x43d   :  { %v1592_v55 = vpop.f32.mrf.mxu0  ;;  %v844_v50 = vld [vmem:[%s1721_s4] sm:$0xff] }
 0x43e   :  { %1173 = vmatprep.mubr.msk.f32.mxu1 %vm86_vm0, %v615_v16  ;;  %v616_v56 = vadd.f32 %v610_v10, %v609_v54  ;;  %v612_v57 = vmul.f32 %v1592_v55, %v1500_v32 }
 0x43f   :  { %v1597_v23 = vpop.f32.mrf.mxu0 }
 0x440   :  { %v611_v25 = vmul.f32 %v1597_v23, %v1552_v15 }
 0x442   :  { %v617_v58 = vadd.f32 %v616_v56, %v611_v25 }
 0x444   :  { %v618_v60 = vadd.f32 %v617_v58, %v612_v57  ;;  %v1069_v58 = vld [vmem:[%s1722_s5 + $0x3] ss:$0 sm:$0xff] }
 0x446   :  { %1174 = vmatmul.mubr.msk.f32.vlgmr.msra.gmra.mxu1 %vm86_vm0, %v618_v60 }
 0x447   :  { %1188 = vmatpush3.msra.mxu1 %v851_v18 }
 0x448   :  { %1189 = vmatprep.subr.mxu1 %v850_v19 }
 0x449   :  { %1190 = vmatpush3.msra.mxu1 %v850_v19 }
 0x44a   :  { %1191 = vmatprep.subr.mxu1 %v849_v20 }
 0x44b   :  { %1192 = vmatpush3.msra.mxu1 %v849_v20 }
 0x44c   :  { %1193 = vmatprep.subr.mxu1 %v848_v21 }
 0x44d   :  { %1194 = vmatpush3.msra.mxu1 %v848_v21 }
 0x44e   :  { %1195 = vmatprep.subr.mxu1 %v847_v45 }
 0x44f   :  { %1196 = vmatpush3.msra.mxu1 %v847_v45 }
 0x450   :  { %1197 = vmatprep.subr.mxu1 %v846_v47 }
 0x451   :  { %1198 = vmatpush3.msra.mxu1 %v846_v47 }
 0x452   :  { %1199 = vmatprep.subr.mxu1 %v845_v48 }
 0x453   :  { %1200 = vmatpush3.msra.mxu1 %v845_v48 }
 0x454   :  { %1201 = vmatprep.subr.mxu1 %v844_v50 }
 0x455   :  { %1202 = vmatpush3.msra.mxu1 %v844_v50 }
 0x506   :  { %v1175_v29 = vpop.f32.mrf.mxu1 }
 0x507   :  { %v706_v59 = vadd.f32 %v1175_v29, %v1061_v28 }
 0x508   :  { %v700_v61 = vpop.f32.mrf.mxu1 }
 0x509   :  { %v701_v62 = vadd.f32 %v1061_v28, %v700_v61  ;;  %v710_v63 = vadd.f32 %v706_v59, %v1407_v7 }
 0x50b   :  { %v714_v0 = vsel %vm86_vm0, %v710_v63, 0.0  ;;  %v709_v1 = vadd.f32 %v701_v62, %v1385_v2  ;;  %v754_v2 = vld [vmem:[#allocation6 + $0x10] sm:$0xff] }
 0x50c   :  { %715 = vadd.xlane.f32.xlu1 %v714_v0  ;;  %1178 = vmatprep.subr.mxu0 %v754_v2 }
 0x50d   :  { %v711_v32 = vsel %vm86_vm0, %v709_v1, 0.0  ;;  %1179 = vmatpush3.msra.mxu0 %v754_v2 }
 0x50e   :  { %712 = vadd.xlane.f32.xlu0 %v711_v32  ;;  %1180 = vmatprep.subr.mxu0 %v753_v14 }
 0x50f   :  { %1181 = vmatpush3.msra.mxu0 %v753_v14 }
 0x510   :  { %1182 = vmatprep.subr.mxu0 %v752_v17 }
 0x511   :  { %1183 = vmatpush3.msra.mxu0 %v752_v17 }
 0x595   :  { %v716_v3 = vpop.xlane.xlu1 %715 }
 0x596   :  { %v719_v4 = vmul.f32 0.03125, %v716_v3 }
 0x597   :  { %v713_v5 = vpop.xlane.xlu0 %712 }
 0x598   :  { %v718_v6 = vmul.f32 0.03125, %v713_v5  ;;  %v721_v8 = vsub.f32 %v710_v63, %v719_v4 }
 0x59a   :  { %v720_v51 = vsub.f32 %v709_v1, %v718_v6  ;;  %v723_v11 = vmul.f32 %v721_v8, %v721_v8 }
 0x59c   :  { %v722_v9 = vmul.f32 %v720_v51, %v720_v51  ;;  %v727_v7 = vsel %vm86_vm0, %v723_v11, 0.0 }
 0x59e   :  { %v724_v15 = vsel %vm86_vm0, %v722_v9, 0.0 }
 0x59f   :  { %725 = vadd.xlane.f32.xlu0 %v724_v15 }
 0x5a3   :  { %728 = vadd.xlane.f32.xlu0 %v727_v7 }
 0x628   :  { %v726_v22 = vpop.xlane.xlu0 %725 }
 0x629   :  { %v730_v13 = vmul.f32 0.03125, %v726_v22 }
 0x62b   :  { %v732_v24 = vadd.f32 1e-05, %v730_v13 }
 0x62c   :  { %v729_v26 = vpop.xlane.xlu0 %728 }
 0x62d   :  { %1250 = vrsqrt.f32 %v732_v24  ;;  %v731_v27 = vmul.f32 0.03125, %v729_v26 }
 0x62f   :  { %v733_v30 = vadd.f32 1e-05, %v731_v27 }
 0x631   :  { %1252 = vrsqrt.f32 %v733_v30  ;;  %v1072_v30 = vld [vmem:[%s1722_s5 + $0x6] ss:$0 sm:$0xff] }
 0x63a   :  { %v1251_v31 = vpop.eup %1250 }
 0x63b   :  { %v736_v34 = vmul.f32 %v1251_v31, %v720_v51 }
 0x63d   :  { %v743_v36 = vmul.f32 %v1064_v33, %v736_v34  ;;  %v1073_v34 = vld [vmem:[%s1722_s5 + $0x7] ss:$0 sm:$0xff] }
 0x63e   :  { %v1253_v37 = vpop.eup %1252 }
 0x63f   :  { %v737_v38 = vmul.f32 %v1253_v37, %v721_v8  ;;  %v750_v39 = vadd.f32 %v1065_v35, %v743_v36 }
 0x641   :  { %v744_v40 = vmul.f32 %v1064_v33, %v737_v38  ;;  %1184 = vmatprep.mubr.msk.f32.mxu0 %vm86_vm0, %v750_v39 }
 0x643   :  { %v751_v43 = vadd.f32 %v1065_v35, %v744_v40 }
 0x645   :  { %1185 = vmatmul.mubr.msk.f32.vlgmr.msra.gmra.mxu0 %vm86_vm0, %v751_v43 }
 0x705   :  { %v1186_v16 = vpop.f32.mrf.mxu0 }
 0x706   :  { %v839_v54 = vadd.f32 %v1186_v16, %v1066_v52 }
 0x707   :  { %v833_v10 = vpop.f32.mrf.mxu0 }
 0x708   :  { %v834_v56 = vadd.f32 %v1066_v52, %v833_v10  ;;  %v843_v57 = vmax.f32 %v839_v54, 0.0 }
 0x70a   :  { %v842_v25 = vmax.f32 %v834_v56, 0.0 }
 0x70c   :  { %1203 = vmatprep.mubr.msk.f32.mxu1 %vm857_vm2, %v842_v25 }
 0x70d   :  { %1204 = vmatmul.mubr.msk.f32.vlgmr.msra.gmra.mxu1 %vm857_vm2, %v843_v57 }
 0x7cd   :  { %v1205_v60 = vpop.f32.mrf.mxu1 }
 0x7ce   :  { %v936_v28 = vadd.f32 %v1205_v60, %v1069_v58 }
 0x7cf   :  { %v930_v29 = vpop.f32.mrf.mxu1 }
 0x7d0   :  { %v931_v59 = vadd.f32 %v1069_v58, %v930_v29  ;;  %v940_v61 = vadd.f32 %v936_v28, %v751_v43 }
 0x7d2   :  { %v944_v62 = vsel %vm86_vm0, %v940_v61, 0.0  ;;  %v939_v63 = vadd.f32 %v931_v59, %v750_v39 }
 0x7d3   :  { %945 = vadd.xlane.f32.xlu0 %v944_v62 }
 0x7d4   :  { %v941_v0 = vsel %vm86_vm0, %v939_v63, 0.0 }
 0x7d5   :  { %942 = vadd.xlane.f32.xlu1 %v941_v0 }
 0x7e6   :  { %993 = vrot.lane.b32.xlu1 %v1572_v42, %s1327_s23 }
 0x7ea   :  { %997 = vrot.lane.b32.xlu1 %v1580_v46, %s1327_s23 }
 0x7ee   :  { %999 = vrot.lane.b32.xlu1 %v1576_v44, %s1327_s23 }
 0x7f2   :  { %1003 = vrot.lane.b32.xlu1 %v1584_v49, %s1327_s23 }
 0x85c   :  { %v946_v1 = vpop.xlane.xlu0 %945 }
 0x85d   :  { %v948_v32 = vmul.f32 0.03125, %v946_v1 }
 0x85e   :  { %v943_v3 = vpop.xlane.xlu1 %942 }
 0x85f   :  { %v950_v4 = vsub.f32 %v940_v61, %v948_v32  ;;  %v947_v5 = vmul.f32 0.03125, %v943_v3 }
 0x861   :  { %v949_v6 = vsub.f32 %v939_v63, %v947_v5  ;;  %v952_v8 = vmul.f32 %v950_v4, %v950_v4 }
 0x862   :  { %v994_v51 = vpop.permute.xlu1 %993 }
 0x863   :  { %v1018_v42 = vsel %vm1017_vm3, %v994_v51, 0.0  ;;  %v956_v9 = vsel %vm86_vm0, %v952_v8, 0.0  ;;  %v951_v46 = vmul.f32 %v949_v6, %v949_v6 }
 0x864   :  { %1026 = vst [vmem:[%s1724_s7 + $0x10] sm:$0xff] %v1018_v42  ;;  %957 = vadd.xlane.f32.xlu0 %v956_v9 }
 0x865   :  { %v953_v44 = vsel %vm86_vm0, %v951_v46, 0.0 }
 0x866   :  { %954 = vadd.xlane.f32.xlu1 %v953_v44  ;;  %v998_v49 = vpop.permute.xlu1 %997 }
 0x867   :  { %v1020_v15 = vsel %vm1017_vm3, %v998_v49, 0.0 }
 0x868   :  { %1028 = vst [vmem:[%s1724_s7 + $0x20] sm:$0xff] %v1020_v15 }
 0x86a   :  { %v1000_v11 = vpop.permute.xlu1 %999 }
 0x86b   :  { %v1021_v7 = vsel %vm1017_vm3, %v1000_v11, 0.0 }
 0x86c   :  { %1029 = vst [vmem:[%s1724_s7 + $0x28] sm:$0xff] %v1021_v7 }
 0x86e   :  { %v1004_v12 = vpop.permute.xlu1 %1003 }
 0x86f   :  { %v1023_v2 = vsel %vm1017_vm3, %v1004_v12, 0.0 }
 0x870   :  { %1031 = vst [vmem:[%s1724_s7 + $0x38] sm:$0xff] %v1023_v2 }
 0x877   :  { %1007 = vrot.lane.b32.xlu1 %v1592_v55, %s1327_s23 }
 0x87a   :  { %995 = vrot.lane.b32.xlu0 %v1570_v41, %s1327_s23 }
 0x87e   :  { %1001 = vrot.lane.b32.xlu0 %v1588_v53, %s1327_s23 }
 0x882   :  { %1005 = vrot.lane.b32.xlu0 %v1597_v23, %s1327_s23 }
 0x8ed   :  { %v958_v14 = vpop.xlane.xlu0 %957 }
 0x8ee   :  { %v960_v17 = vmul.f32 0.03125, %v958_v14 }
 0x8ef   :  { %v955_v18 = vpop.xlane.xlu1 %954 }
 0x8f0   :  { %v962_v19 = vadd.f32 1e-05, %v960_v17  ;;  %v959_v20 = vmul.f32 0.03125, %v955_v18 }
 0x8f1   :  { %v996_v21 = vpop.permute.xlu0 %995 }
 0x8f2   :  { %1254 = vrsqrt.f32 %v962_v19  ;;  %v961_v22 = vadd.f32 1e-05, %v959_v20  ;;  %v1019_v13 = vsel %vm1017_vm3, %v996_v21, 0.0 }
 0x8f3   :  { %1027 = vst [vmem:[%s1724_s7 + $0x18] sm:$0xff] %v1019_v13  ;;  %v1008_v41 = vpop.permute.xlu1 %1007 }
 0x8f4   :  { %1256 = vrsqrt.f32 %v961_v22  ;;  %v1025_v53 = vsel %vm1017_vm3, %v1008_v41, 0.0 }
 0x8f5   :  { %1033 = vst [vmem:[%s1724_s7 + $0x48] sm:$0xff] %v1025_v53  ;;  %v1002_v55 = vpop.permute.xlu0 %1001 }
 0x8f6   :  { %v1022_v23 = vsel %vm1017_vm3, %v1002_v55, 0.0 }
 0x8f7   :  { %1030 = vst [vmem:[%s1724_s7 + $0x30] sm:$0xff] %v1022_v23 }
 0x8f9   :  { %v1006_v24 = vpop.permute.xlu0 %1005 }
 0x8fa   :  { %v1024_v26 = vsel %vm1017_vm3, %v1006_v24, 0.0 }
 0x8fb   :  { %1032 = vst [vmem:[%s1724_s7 + $0x40] sm:$0xff] %v1024_v26 }
 0x8ff   :  { %v1255_v27 = vpop.eup %1254 }
 0x900   :  { %v966_v31 = vmul.f32 %v1255_v27, %v950_v4 }
 0x901   :  { %v1257_v33 = vpop.eup %1256 }
 0x902   :  { %v973_v35 = vmul.f32 %v1072_v30, %v966_v31  ;;  %v965_v36 = vmul.f32 %v1257_v33, %v949_v6 }
 0x904   :  { %v980_v37 = vadd.f32 %v1073_v34, %v973_v35  ;;  %v972_v38 = vmul.f32 %v1072_v30, %v965_v36 }
 0x906   :  { %v982_v39 = vsel %vm86_vm0, %v980_v37, 0.0  ;;  %v979_v40 = vadd.f32 %v1073_v34, %v972_v38 }
 0x907   :  { %984 = vst [vmem:[%s1724_s7 + $0x8] sm:$0xff] %v982_v39 }
 0x908   :  { %v981_v43 = vsel %vm86_vm0, %v979_v40, 0.0 }
 0x909   :  { %983 = vst [vmem:[%s1724_s7] sm:$0xff] %v981_v43 }
 0x90a   :  { %1038 = vsyncpa [#allocation3], 1 }
 0x90b   :  { %1039 = vsyncpa [#allocation5], 1 }

</bundles_post_ra>
